<compile_context>
chip_gen: v5e
topology: v5e:2x2
jax: 0.10.0
libtpu: 0.0.40
codegen_flags: <defaults>
</compile_context>

<pallas_src>
import functools

import jax
import jax.numpy as jnp
import numpy as np
from jax import lax
from jax.experimental import pallas as pl
from jax.experimental.pallas import tpu as pltpu

# Mirrors PoolingType IntEnum
LAST, ALL, CLS, STEP, MEAN = 0, 1, 2, 3, 4

_LANE = 128
_SUBLANE = 8


def _round_up(x, m):
    return (x + m - 1) // m * m


def _head(pooled, *, normalize, softmax, h_valid):
    """PoolerHead on a (R, Hp) f32 tile. Lanes >= h_valid are zero padding."""
    hp = pooled.shape[-1]
    if normalize:  # F.normalize(p=2, dim=1); padded lanes are 0 -> no effect
        ssq = jnp.sum(pooled * pooled, axis=-1, keepdims=True)
        pooled = pooled * lax.rsqrt(jnp.maximum(ssq, 1e-24))  # EUP rsqrt
    if softmax:    # F.softmax(dim=-1); exclude padded lanes from the softmax
        if h_valid != hp:
            lane = lax.broadcasted_iota(jnp.int32, pooled.shape, 1)
            pooled = jnp.where(lane < h_valid, pooled, -1e30)
        m = jnp.max(pooled, axis=-1, keepdims=True)
        e = jnp.exp(pooled - m)
        denom = jnp.sum(e, axis=-1, keepdims=True)
        pooled = e * pl.reciprocal(denom, approx=False)       # EUP reciprocal
    return pooled


# ----------------------------------------------------------------------------
# CLS / LAST : pipelined row gather from HBM
# ----------------------------------------------------------------------------
def _gather_head_kernel(idx_ref, x_hbm, o_ref, xbuf, sems, *,
                        rows, normalize, softmax, h_valid):
    """One grid step gathers `rows` scattered token rows from HBM, applies the
    head, writes one (rows, Hp) tile. Block b+1's DMAs are issued before
    waiting on block b (double-buffered slots), so the gather pipelines."""
    b = pl.program_id(0)
    nb = pl.num_programs(0)
    slot = b % 2

    def _copy(blk, s, j):
        # Real src slice in both start() and wait() -> robust descriptor match.
        return pltpu.make_async_copy(
            x_hbm.at[pl.ds(idx_ref[blk * rows + j], 1), :],
            xbuf.at[pl.ds(s * rows + j, 1), :],
            sems.at[s * rows + j])

    @pl.when(b == 0)                       # prime slot 0 with block 0
    def _():
        for j in range(rows):
            _copy(0, 0, j).start()

    @pl.when(b + 1 < nb)                   # prefetch next block into other slot
    def _():
        for j in range(rows):
            _copy(b + 1, 1 - slot, j).start()

    for j in range(rows):                  # wait on the current block
        _copy(b, slot, j).wait()

    base = pl.multiple_of(slot * rows, rows)
    pooled = xbuf[pl.ds(base, rows), :].astype(jnp.float32)
    o_ref[...] = _head(pooled, normalize=normalize, softmax=softmax,
                       h_valid=h_valid).astype(o_ref.dtype)


# ----------------------------------------------------------------------------
# MEAN : segment mean as a masked MXU matmul, mask built in-kernel
# ----------------------------------------------------------------------------
def _mean_matmul_kernel(blk_lo_ref, blk_hi_ref, starts_ref, ends_ref, inv_ref,
                        x_ref, o_ref, *, tk, normalize, softmax, h_valid):
    """o += W_tile @ X_tile with W a 0/1 segment mask in X's native dtype.
    o_ref (f32, resident across k) is the accumulator; head + 1/len fused at
    the last k step. k tiles outside this i-block's token window are skipped
    (their X DMA is suppressed by the clamped index_map)."""
    i = pl.program_id(0)
    k = pl.program_id(1)
    tm = o_ref.shape[0]

    @pl.when(k == 0)
    def _():
        o_ref[...] = jnp.zeros_like(o_ref)

    active = jnp.logical_and(k >= blk_lo_ref[i], k < blk_hi_ref[i])

    @pl.when(active)
    def _():
        tok = k * tk + lax.broadcasted_iota(jnp.int32, (tm, tk), 1)
        w = jnp.logical_and(tok >= starts_ref[...],
                            tok < ends_ref[...]).astype(x_ref.dtype)
        # Native-dtype matmul (bf16 stays bf16 on the MXU), f32 accumulate.
        o_ref[...] += jnp.dot(w, x_ref[...],
                              preferred_element_type=jnp.float32)

    @pl.when(k == pl.num_programs(1) - 1)
    def _():
        pooled = o_ref[...] * inv_ref[...]          # 1/len applied in f32
        o_ref[...] = _head(pooled, normalize=normalize, softmax=softmax,
                           h_valid=h_valid)


# ----------------------------------------------------------------------------
# Wrapper
# ----------------------------------------------------------------------------
def simple_pooler(hidden_states, prompt_lens, *, pooling_type, normalize,
                  softmax, seqs_per_step=32, mean_block_rows=None,
                  mean_block_tokens=None):
    """SimplePooler.forward for LAST / CLS / MEAN pooling.

    hidden_states: [T, H] float array (token-major flattened batch).
    prompt_lens:   [N] int32, sum(prompt_lens) == T.
    Returns [N, H] float32 pooled (+ normalized / softmaxed) embeddings.
    """
    if pooling_type in (ALL, STEP):
        # TODO(synk): ALL / STEP pooling produce ragged python lists of
        # per-sequence tensors; no fixed-shape Pallas output exists.
        raise NotImplementedError("ALL / STEP pooling produce ragged outputs")

    T, H = hidden_states.shape
    N = prompt_lens.shape[0]
    lens = prompt_lens.astype(jnp.int32)
    starts = jnp.concatenate(
        [jnp.zeros((1,), jnp.int32), jnp.cumsum(lens)[:-1]])
    ends = starts + lens

    # Lane-dense layout: pad H to a multiple of 128 with zeros (sliced off at
    # the end) so all in-kernel loads/stores are unmasked full-lane ops.
    h_pad = _round_up(H, _LANE)
    if h_pad != H:
        hidden_states = jnp.pad(hidden_states, ((0, 0), (0, h_pad - H)))

    if pooling_type == MEAN:
        item = jnp.dtype(hidden_states.dtype).itemsize

        # Row-block size: up to 256 (MXU-friendly, avoids re-streaming X for
        # moderate N); the per-i-block token window handles larger N.
        tm = max(_SUBLANE, min(256, _round_up(N, _SUBLANE)))
        if mean_block_rows is not None:                   # test hook
            tm = _round_up(mean_block_rows, _SUBLANE)
        n_pad = _round_up(N, tm)
        gi = n_pad // tm

        # Token-tile size from an explicit VMEM budget (dtype-aware, counts
        # the double-buffered X tiles, the resident f32 output block and the
        # in-kernel mask temp). 48 MiB is safe on v5e/v6e (128 MiB physical)
        # and v7x (64 MiB physical).
        vmem_limit = 48 << 20
        out_bytes = 2 * tm * h_pad * 4
        budget = max(vmem_limit - out_bytes - (4 << 20),
                     2 * _LANE * h_pad * item)
        tk = 512
        while tk > 128 and (2 * tk * h_pad * item + tm * tk * (item + 4)) > budget:
            tk //= 2
        tk = min(tk, _round_up(T, _LANE))
        if mean_block_tokens is not None:                 # test hook (mult of 128)
            tk = mean_block_tokens
        t_pad = _round_up(T, tk)
        num_k = t_pad // tk

        x = hidden_states
        if t_pad != T:
            x = jnp.pad(x, ((0, t_pad - T), (0, 0)))

        # Tiny per-row metadata as (n_pad, 1) VMEM tiles (no dense W in HBM).
        starts_2d = jnp.pad(starts, (0, n_pad - N))[:, None]
        ends_2d = jnp.pad(ends, (0, n_pad - N))[:, None]
        inv_2d = jnp.pad(1.0 / jnp.maximum(lens, 1).astype(jnp.float32),
                         (0, n_pad - N), constant_values=1.0)[:, None]

        # Per-i-block token-block window: clamp the X index_map (suppresses
        # redundant DMAs) and skip the dot for k tiles outside the window.
        valid_r = (jnp.arange(n_pad) < N).reshape(gi, tm)
        starts_r = jnp.pad(starts, (0, n_pad - N)).reshape(gi, tm)
        ends_r = jnp.pad(ends, (0, n_pad - N)).reshape(gi, tm)
        blk_lo = jnp.min(jnp.where(valid_r, starts_r // tk, num_k - 1), axis=1)
        blk_hi = jnp.max(
            jnp.where(valid_r, (jnp.maximum(ends_r, 1) - 1) // tk + 1, 1),
            axis=1)
        blk_lo = jnp.clip(jnp.minimum(blk_lo, blk_hi - 1), 0, num_k - 1)
        blk_hi = jnp.clip(blk_hi, blk_lo + 1, num_k)
        blk_lo = blk_lo.astype(jnp.int32)
        blk_hi = blk_hi.astype(jnp.int32)

        def x_map(i, k, lo_ref, hi_ref):
            kk = jnp.minimum(jnp.maximum(k, lo_ref[i]), hi_ref[i] - 1)
            return (kk, 0)

        kernel = functools.partial(_mean_matmul_kernel, tk=tk,
                                   normalize=normalize, softmax=softmax,
                                   h_valid=H)
        out = pl.pallas_call(
            kernel,
            out_shape=jax.ShapeDtypeStruct((n_pad, h_pad), jnp.float32),
            grid_spec=pltpu.PrefetchScalarGridSpec(
                num_scalar_prefetch=2,                    # blk_lo, blk_hi
                grid=(gi, num_k),
                in_specs=[
                    pl.BlockSpec((tm, 1), lambda i, k, lo, hi: (i, 0)),
                    pl.BlockSpec((tm, 1), lambda i, k, lo, hi: (i, 0)),
                    pl.BlockSpec((tm, 1), lambda i, k, lo, hi: (i, 0)),
                    pl.BlockSpec((tk, h_pad), x_map),
                ],
                out_specs=pl.BlockSpec((tm, h_pad),
                                       lambda i, k, lo, hi: (i, 0)),
            ),
            compiler_params=pltpu.CompilerParams(
                dimension_semantics=("parallel", "arbitrary"),
                vmem_limit_bytes=vmem_limit),
        )(blk_lo, blk_hi, starts_2d, ends_2d, inv_2d, x)
    else:
        # CLS / LAST: pure row gather. hidden_states stays in HBM (pl.ANY);
        # each grid step DMAs exactly `rows` rows it needs, pipelined.
        if pooling_type == CLS:
            idx = starts
        else:  # LAST
            idx = jnp.clip(starts + lens - 1, 0, T - 1)

        rows = max(_SUBLANE, min(seqs_per_step, _round_up(N, _SUBLANE)))
        n_pad = _round_up(N, rows)
        if n_pad != N:
            idx = jnp.pad(idx, (0, n_pad - N))  # padded rows gather row 0

        kernel = functools.partial(_gather_head_kernel, rows=rows,
                                   normalize=normalize, softmax=softmax,
                                   h_valid=H)
        out = pl.pallas_call(
            kernel,
            out_shape=jax.ShapeDtypeStruct((n_pad, h_pad), jnp.float32),
            grid_spec=pltpu.PrefetchScalarGridSpec(
                num_scalar_prefetch=1,                         # idx -> SMEM
                grid=(n_pad // rows,),
                in_specs=[pl.BlockSpec(memory_space=pl.ANY)],  # raw HBM ref
                out_specs=pl.BlockSpec((rows, h_pad),
                                       lambda b, idx_ref: (b, 0)),
                scratch_shapes=[
                    pltpu.VMEM((2 * rows, h_pad), hidden_states.dtype),
                    pltpu.SemaphoreType.DMA((2 * rows,)),
                ],
            ),
            # "arbitrary": cross-step DMA prefetch state must run sequentially
            # (a megacore split would wait on never-started DMAs).
            compiler_params=pltpu.CompilerParams(
                dimension_semantics=("arbitrary",)),
        )(idx, hidden_states)

    return out[:N, :H]


# ----------------------------------------------------------------------------
# Reference + tests
# ----------------------------------------------------------------------------
def _reference(hidden_states, prompt_lens, *, pooling_type, normalize, softmax):
    x = np.asarray(hidden_states, dtype=np.float32)
    lens = np.asarray(prompt_lens)
    starts = np.concatenate([[0], np.cumsum(lens)[:-1]])
    ends = np.cumsum(lens)
    if pooling_type == MEAN:
        out = np.stack([x[s:e].mean(0) for s, e in zip(starts, ends)])
    elif pooling_type == CLS:
        out = x[starts]
    elif pooling_type == LAST:
        out = x[ends - 1]
    else:
        raise NotImplementedError
    if normalize:
        out = out / np.maximum(np.linalg.norm(out, axis=1, keepdims=True), 1e-12)
    if softmax:
        e = np.exp(out - out.max(-1, keepdims=True))
        out = e / e.sum(-1, keepdims=True)
    return out


if __name__ == "__main__":
    key = jax.random.PRNGKey(0)

    # --- small f32 cases (tiny H padded; lane-dense H) ---
    cases = [
        (16, 32, jnp.array([3, 5, 2, 6], dtype=jnp.int32)),
        (24, 128, jnp.array([7, 9, 8], dtype=jnp.int32)),
    ]
    configs = [
        dict(pooling_type=MEAN, normalize=True, softmax=False),
        dict(pooling_type=LAST, normalize=False, softmax=True),
        dict(pooling_type=CLS, normalize=True, softmax=False),
        dict(pooling_type=MEAN, normalize=False, softmax=True),
    ]
    for ci, (seq, hidden, prompt_lens) in enumerate(cases):
        k = jax.random.fold_in(key, ci)
        hs = jax.random.normal(k, (seq, hidden), dtype=jnp.float32)
        for cfg in configs:
            out = np.asarray(jax.block_until_ready(
                simple_pooler(hs, prompt_lens, **cfg)))
            ref = _reference(hs, prompt_lens, **cfg)
            np.testing.assert_allclose(out, ref, rtol=2e-5, atol=2e-5)

    # --- bf16 MEAN: native-dtype MXU path, multi i-block + token-window clamp
    lens = jnp.array([23, 31, 17, 40, 9, 28, 35, 12, 26, 19, 33, 27],
                     dtype=jnp.int32)          # sum = 300
    T = int(lens.sum())
    hs = jax.random.normal(jax.random.fold_in(key, 7), (T, 128),
                           dtype=jnp.float32).astype(jnp.bfloat16)
    for cfg in [dict(pooling_type=MEAN, normalize=True, softmax=False),
                dict(pooling_type=MEAN, normalize=False, softmax=True)]:
        out = np.asarray(jax.block_until_ready(
            simple_pooler(hs, lens, mean_block_rows=8, mean_block_tokens=128,
                          **cfg)))
        ref = _reference(np.asarray(hs, np.float32), lens, **cfg)
        np.testing.assert_allclose(out, ref, rtol=1e-2, atol=1e-2)

    # --- LAST / CLS gather: multi-step double-buffered DMA pipeline ---
    lens = jnp.array([3, 1, 4, 2, 5, 3, 2, 4, 1, 3,
                      2, 4, 3, 2, 5, 1, 2, 3, 4, 2], dtype=jnp.int32)  # T=56
    T = int(lens.sum())
    hs = jax.random.normal(jax.random.fold_in(key, 11), (T, 96),
                           dtype=jnp.float32)
    for cfg in [dict(pooling_type=LAST, normalize=True, softmax=False),
                dict(pooling_type=CLS, normalize=False, softmax=True)]:
        out = np.asarray(jax.block_until_ready(
            simple_pooler(hs, lens, seqs_per_step=8, **cfg)))
        ref = _reference(hs, lens, **cfg)
        np.testing.assert_allclose(out, ref, rtol=2e-5, atol=2e-5)

    print("KERNEL_OK")
</pallas_src>

<mosaic_0001>
module attributes {stable_mosaic.version = 11 : i64} {
  func.func @_mean_matmul_kernel(%arg0: i32, %arg1: i32, %arg2: memref<1xi32, #tpu.memory_space<smem>>, %arg3: memref<1xi32, #tpu.memory_space<smem>>, %arg4: memref<8x1xi32, #tpu.memory_space<vmem>>, %arg5: memref<8x1xi32, #tpu.memory_space<vmem>>, %arg6: memref<8x1xf32, #tpu.memory_space<vmem>>, %arg7: memref<128x128xf32, #tpu.memory_space<vmem>>, %arg8: memref<8x128xf32, #tpu.memory_space<vmem>>) attributes {dimension_semantics = [#tpu.dimension_semantics<parallel>, #tpu.dimension_semantics<arbitrary>], iteration_bounds = array<i64: 1, 1>, scalar_prefetch = 2 : i64, scratch_operands = 0 : i64, tpu.core_type = #tpu.core_type<tc>, window_params = [{transform_indices = @transform_0, window_bounds = array<i64: 8, 1>}, {transform_indices = @transform_1, window_bounds = array<i64: 8, 1>}, {transform_indices = @transform_2, window_bounds = array<i64: 8, 1>}, {transform_indices = @transform_3, window_bounds = array<i64: 128, 128>}, {transform_indices = @transform_4, window_bounds = array<i64: 8, 128>}]} {
    %c0_i32 = arith.constant 0 : i32
    %0 = arith.cmpi eq, %arg1, %c0_i32 : i32
    %1 = arith.extui %0 : i1 to i32
    %c0_i32_0 = arith.constant 0 : i32
    %2 = arith.cmpi ne, %1, %c0_i32_0 : i32
    scf.if %2 {
      %cst = arith.constant 0.000000e+00 : f32
      %15 = vector.broadcast %cst : f32 to vector<8x128xf32>
      %c0 = arith.constant 0 : index
      %c0_4 = arith.constant 0 : index
      %16 = vector.load %arg8[%c0, %c0_4] : memref<8x128xf32, #tpu.memory_space<vmem>>, vector<8x128xf32>
      tpu.vector_store %arg8[%c0, %c0_4], %15 {strides = array<i32>} : memref<8x128xf32, #tpu.memory_space<vmem>>, vector<8x128xf32>,
    } else {
    }
    %3 = arith.index_cast %arg0 : i32 to index
    %4 = memref.load %arg2[%3] : memref<1xi32, #tpu.memory_space<smem>>
    %5 = arith.cmpi sge, %arg1, %4 : i32
    %6 = arith.index_cast %arg0 : i32 to index
    %7 = memref.load %arg3[%6] : memref<1xi32, #tpu.memory_space<smem>>
    %8 = arith.cmpi slt, %arg1, %7 : i32
    %9 = arith.andi %5, %8 : i1
    %10 = arith.extui %9 : i1 to i32
    %c0_i32_1 = arith.constant 0 : i32
    %11 = arith.cmpi ne, %10, %c0_i32_1 : i32
    scf.if %11 {
      %c128_i32 = arith.constant 128 : i32
      %15 = arith.muli %arg1, %c128_i32 : i32
      %16 = tpu.iota {dimensions = array<i32: 1>} : vector<8x128xi32>
      %17 = vector.broadcast %15 : i32 to vector<8x128xi32>
      %18 = arith.addi %17, %16 : vector<8x128xi32>
      %c0 = arith.constant 0 : index
      %c0_4 = arith.constant 0 : index
      %19 = vector.load %arg4[%c0, %c0_4] : memref<8x1xi32, #tpu.memory_space<vmem>>, vector<8x1xi32>
      %20 = vector.broadcast %19 : vector<8x1xi32> to vector<8x128xi32>
      %21 = arith.cmpi sge, %18, %20 : vector<8x128xi32>
      %c0_5 = arith.constant 0 : index
      %c0_6 = arith.constant 0 : index
      %22 = vector.load %arg5[%c0_5, %c0_6] : memref<8x1xi32, #tpu.memory_space<vmem>>, vector<8x1xi32>
      %23 = vector.broadcast %22 : vector<8x1xi32> to vector<8x128xi32>
      %24 = arith.cmpi slt, %18, %23 : vector<8x128xi32>
      %25 = arith.andi %21, %24 : vector<8x128xi1>
      %26 = arith.extui %25 : vector<8x128xi1> to vector<8x128xi32>
      %27 = arith.sitofp %26 : vector<8x128xi32> to vector<8x128xf32>
      %c0_7 = arith.constant 0 : index
      %c0_8 = arith.constant 0 : index
      %28 = vector.load %arg8[%c0_7, %c0_8] : memref<8x128xf32, #tpu.memory_space<vmem>>, vector<8x128xf32>
      %c0_9 = arith.constant 0 : index
      %c0_10 = arith.constant 0 : index
      %29 = vector.load %arg7[%c0_9, %c0_10] : memref<128x128xf32, #tpu.memory_space<vmem>>, vector<128x128xf32>
      %cst = arith.constant dense<0.000000e+00> : vector<8x128xf32>
      %30 = tpu.matmul %27, %29, %cst {dimension_numbers = #tpu.dot_dimension_numbers<[1], [0], [0], [1], [0, 0, 1, 1], [], []>} : vector<8x128xf32>, vector<128x128xf32>, vector<8x128xf32> -> vector<8x128xf32>
      %31 = arith.addf %28, %30 : vector<8x128xf32>
      %c0_11 = arith.constant 0 : index
      %c0_12 = arith.constant 0 : index
      %32 = vector.load %arg8[%c0_11, %c0_12] : memref<8x128xf32, #tpu.memory_space<vmem>>, vector<8x128xf32>
      tpu.vector_store %arg8[%c0_11, %c0_12], %31 {strides = array<i32>} : memref<8x128xf32, #tpu.memory_space<vmem>>, vector<8x128xf32>,
    } else {
    }
    %c0_i32_2 = arith.constant 0 : i32
    %12 = arith.cmpi eq, %arg1, %c0_i32_2 : i32
    %13 = arith.extui %12 : i1 to i32
    %c0_i32_3 = arith.constant 0 : i32
    %14 = arith.cmpi ne, %13, %c0_i32_3 : i32
    scf.if %14 {
      %c0 = arith.constant 0 : index
      %c0_4 = arith.constant 0 : index
      %15 = vector.load %arg8[%c0, %c0_4] : memref<8x128xf32, #tpu.memory_space<vmem>>, vector<8x128xf32>
      %c0_5 = arith.constant 0 : index
      %c0_6 = arith.constant 0 : index
      %16 = vector.load %arg6[%c0_5, %c0_6] : memref<8x1xf32, #tpu.memory_space<vmem>>, vector<8x1xf32>
      %17 = vector.broadcast %16 : vector<8x1xf32> to vector<8x128xf32>
      %18 = arith.mulf %15, %17 : vector<8x128xf32>
      %19 = arith.mulf %18, %18 : vector<8x128xf32>
      %cst = arith.constant dense<0.000000e+00> : vector<8xf32>
      %20 = vector.multi_reduction <add>, %19, %cst [1] : vector<8x128xf32> to vector<8xf32>
      %21 = vector.shape_cast %20 : vector<8xf32> to vector<8x1xf32>
      %cst_7 = arith.constant 1.000000e-24 : f32
      %22 = vector.broadcast %cst_7 : f32 to vector<8x1xf32>
      %23 = arith.maximumf %21, %22 : vector<8x1xf32>
      %24 = math.rsqrt %23 : vector<8x1xf32>
      %25 = vector.broadcast %24 : vector<8x1xf32> to vector<8x128xf32>
      %26 = arith.mulf %18, %25 : vector<8x128xf32>
      %c0_8 = arith.constant 0 : index
      %c0_9 = arith.constant 0 : index
      %27 = vector.load %arg8[%c0_8, %c0_9] : memref<8x128xf32, #tpu.memory_space<vmem>>, vector<8x128xf32>
      tpu.vector_store %arg8[%c0_8, %c0_9], %26 {strides = array<i32>} : memref<8x128xf32, #tpu.memory_space<vmem>>, vector<8x128xf32>,
    } else {
    }
    return
  }
  func.func @transform_0(%arg0: i32, %arg1: i32, %arg2: memref<1xi32, #tpu.memory_space<smem>>, %arg3: memref<1xi32, #tpu.memory_space<smem>>) -> (i32, i32) {
    %c0_i32 = arith.constant 0 : i32
    %c0_i32_0 = arith.constant 0 : i32
    return %arg0, %c0_i32 : i32, i32
  }
  func.func @transform_1(%arg0: i32, %arg1: i32, %arg2: memref<1xi32, #tpu.memory_space<smem>>, %arg3: memref<1xi32, #tpu.memory_space<smem>>) -> (i32, i32) {
    %c0_i32 = arith.constant 0 : i32
    %c0_i32_0 = arith.constant 0 : i32
    return %arg0, %c0_i32 : i32, i32
  }
  func.func @transform_2(%arg0: i32, %arg1: i32, %arg2: memref<1xi32, #tpu.memory_space<smem>>, %arg3: memref<1xi32, #tpu.memory_space<smem>>) -> (i32, i32) {
    %c0_i32 = arith.constant 0 : i32
    %c0_i32_0 = arith.constant 0 : i32
    return %arg0, %c0_i32 : i32, i32
  }
  func.func @transform_3(%arg0: i32, %arg1: i32, %arg2: memref<1xi32, #tpu.memory_space<smem>>, %arg3: memref<1xi32, #tpu.memory_space<smem>>) -> (i32, i32) {
    %0 = arith.index_cast %arg0 : i32 to index
    %1 = memref.load %arg2[%0] : memref<1xi32, #tpu.memory_space<smem>>
    %2 = arith.maxsi %arg1, %1 : i32
    %3 = arith.index_cast %arg0 : i32 to index
    %4 = memref.load %arg3[%3] : memref<1xi32, #tpu.memory_space<smem>>
    %c1_i32 = arith.constant 1 : i32
    %5 = arith.subi %4, %c1_i32 : i32
    %6 = arith.minsi %2, %5 : i32
    %c0_i32 = arith.constant 0 : i32
    %c0_i32_0 = arith.constant 0 : i32
    return %6, %c0_i32 : i32, i32
  }
  func.func @transform_4(%arg0: i32, %arg1: i32, %arg2: memref<1xi32, #tpu.memory_space<smem>>, %arg3: memref<1xi32, #tpu.memory_space<smem>>) -> (i32, i32) {
    %c0_i32 = arith.constant 0 : i32
    %c0_i32_0 = arith.constant 0 : i32
    return %arg0, %c0_i32 : i32, i32
  }
}

</mosaic_0001>

<bundles_post_ra>
// kernel: tpu_custom_call.1
= control target key start
LH: loop header
LB: loop body
LE: loop exit
PB: predicated region body
PF: predicated region fallthrough
CT: control target
= control target key end

     0   :  { %13 = vsyncpa [#allocation6], 0  ;;  %s324_s0 = inlined_call_operand.<no memory space> [shape: s32[1], index: 0, kind: input, shape index: {}]   ;;  %s325_s1 = inlined_call_operand.<no memory space> [shape: s32[1], index: 1, kind: input, shape index: {}]   ;;  %s326_s2 = inlined_call_operand.vmem [shape: s32[8,1], index: 2, kind: input, shape index: {}]   ;;  %s327_s3 = inlined_call_operand.vmem [shape: s32[8,1], index: 3, kind: input, shape index: {}]   ;;  %s328_s4 = inlined_call_operand.vmem [shape: f32[8,1], index: 4, kind: input, shape index: {}]   ;;  %s329_s5 = inlined_call_operand.hbm [shape: f32[128,128], index: 5, kind: input, shape index: {}]   ;;  %s330_s6 = inlined_call_operand.hbm [shape: f32[8,128], index: 6, kind: output, shape index: {}]  }
   0x1   :  { %14 = vsyncpa [#allocation7], 0  ;;  %p172_p0 = scmp.lt.s32.totalorder %s324_s0, 0  ;;  %s173_s25 = sadd.s32 4294967295, %s325_s1 }
   0x2   :  { %s245_s29 = smov [#allocation5]   ;;  %s197_s16 = scalar_lea.hbm %s329_s5, 128 }
   0x3   :  { %s25_s28 = scalar_select %p172_p0, 0, %s324_s0 }
   0x4   :  { %s37_s30 = sshll.u32 %s245_s29, 4  ;;  %s38_s30 = int_to_ptr.vmem [resolvable:$true] %s37_s30 }
   0x5   :  { %p28_p1 = scmp.lt.s32.totalorder %s25_s28, %s173_s25 }
   0x7   :  { %s332_s28 = smov (!%p28_p1, %s25_s28), %s173_s25 }
   0x8   :  { %s180_s7 = sshll.u32 %s332_s28, 7 }
   0x9   :  { %s34_s10 = scalar_lea.hbm %s329_s5, %s180_s7 }
   0xa   :  { %s35_s11 = sshll.u32 %s34_s10, 4  ;;  %s36_s11 = int_to_ptr.hbm [resolvable:$true] %s35_s11 }
   0xb   :  { %s193_s12 = sshra.s32 %s36_s11, 4  ;;  %s194_s12 = int_to_ptr.hbm [resolvable:$true] %s193_s12 }
   0xc   :  { %s195_s13 = scalar_lea.hbm %s194_s12, 128  ;;  %p198_p3 = scmp.lt.s32.totalorder %s194_s12, %s329_s5 }
   0xd   :  { %p196_p2 = scmp.ne.s32.totalorder %s194_s12, %s195_s13  ;;  %p199_p4 = scmp.lt.s32.totalorder %s197_s16, %s195_s13 }
   0xf   :  { %p200_p5 = por %p199_p4, %p198_p3 }
  0x11   :  { %p201_p6 = pnand %p200_p5, %p196_p2 }
  0x13   :  { %204 = shalt.err (!%p201_p6)
}
  0x14   :  { %s246_s19 = smov 128   ;;  %s247_s20 = smov 8  }
  0x15   :  { %43 = dma.hbm_to_vmem [thread:$0]  %s36_s11, 2048, %s38_s30, [#allocation6], %s246_s19, %s246_s19, %s247_s20  }
  0x16   :  { %241 = dma.done.wait [#allocation6], 2048  }
  0x17   :  { %242 = vsyncadd [#allocation6], 4294965248  ;;  %p176_p7 = scmp.le.s32.totalorder %s324_s0, 0  ;;  %p177_p8 = scmp.gt.s32.totalorder %s325_s1, 0  ;;  %v248_v0 = vmov 0.0  }
  0x18   :  { %60 = vst [vmem:[#allocation8] sm:$0xff] %v248_v0 }
  0x19   :  { %p65_p9 = pnand %p177_p8, %p176_p7 }
  0x1b   :  { %68 = sbr.rel (%p65_p9) target bundleno = 288 (0x120), region = 29 }
  0x20   :  { %v74_v1 = vld [vmem:[%s326_s2] sm:$0xff]  ;;  %v103_v2 = vld [vmem:[#allocation5 + $0x78] sm:$0xff]  ;;  %v249_v3 = vmov 0   ;;  %v102_v4 = vld [vmem:[#allocation5 + $0x70] sm:$0xff]  ;;  %v70_v21 = vlaneseq  ;;  %v250_v24 = vmov 1.0  }
  0x21   :  { %189 = vset.pattern.permute.xlu0 %v249_v3  ;;  %104 = vmatpush.msra.mxu0 %v103_v2  ;;  %v101_v5 = vld [vmem:[#allocation5 + $0x68] sm:$0xff]  ;;  %v100_v6 = vld [vmem:[#allocation5 + $0x60] sm:$0xff]  ;;  %v99_v7 = vld [vmem:[#allocation5 + $0x58] sm:$0xff] }
  0x22   :  { %76 = vperm.xlu0 %189, %v74_v1   ;;  %v79_v8 = vld [vmem:[%s327_s3] sm:$0xff]  ;;  %v98_v9 = vld [vmem:[#allocation5 + $0x50] sm:$0xff]  ;;  %v97_v10 = vld [vmem:[#allocation5 + $0x48] sm:$0xff]  ;;  %v71_v22 = vand.u32 127, %v70_v21 }
  0x23   :  { %105 = vmatpush.msra.mxu0 %v102_v4  ;;  %v96_v11 = vld [vmem:[#allocation5 + $0x40] sm:$0xff]  ;;  %v95_v12 = vld [vmem:[#allocation5 + $0x38] sm:$0xff]  ;;  %v94_v13 = vld [vmem:[#allocation5 + $0x30] sm:$0xff] }
  0x24   :  { %v93_v14 = vld [vmem:[#allocation5 + $0x28] sm:$0xff]  ;;  %v92_v15 = vld [vmem:[#allocation5 + $0x20] sm:$0xff]  ;;  %v91_v16 = vld [vmem:[#allocation5 + $0x18] sm:$0xff] }
  0x25   :  { %106 = vmatpush.msra.mxu0 %v101_v5  ;;  %v90_v17 = vld [vmem:[#allocation5 + $0x10] sm:$0xff]  ;;  %v89_v18 = vld [vmem:[#allocation5 + $0x8] sm:$0xff]  ;;  %v88_v19 = vld [vmem:[#allocation5] sm:$0xff] }
  0x26   :  { %v87_v25 = vld [vmem:[#allocation8] sm:$0xff] }
  0x27   :  { %107 = vmatpush.msra.mxu0 %v100_v6 }
  0x29   :  { %108 = vmatpush.msra.mxu0 %v99_v7 }
  0x2a   :  { %81 = vperm.xlu0 %189, %v79_v8  }
  0x2b   :  { %109 = vmatpush.msra.mxu0 %v98_v9 }
  0x2d   :  { %110 = vmatpush.msra.mxu0 %v97_v10 }
  0x2f   :  { %111 = vmatpush.msra.mxu0 %v96_v11 }
  0x31   :  { %112 = vmatpush.msra.mxu0 %v95_v12 }
  0x33   :  { %113 = vmatpush.msra.mxu0 %v94_v13 }
  0x35   :  { %114 = vmatpush.msra.mxu0 %v93_v14 }
  0x37   :  { %115 = vmatpush.msra.mxu0 %v92_v15 }
  0x39   :  { %116 = vmatpush.msra.mxu0 %v91_v16 }
  0x3b   :  { %117 = vmatpush.msra.mxu0 %v90_v17 }
  0x3d   :  { %118 = vmatpush.msra.mxu0 %v89_v18 }
  0x3f   :  { %119 = vmatpush.msra.mxu0 %v88_v19 }
  0x94   :  { %v77_v20 = vpop.permute.xlu0 %76 }
  0x95   :  { %vm78_vm0 = vcmp.ge.s32.totalorder %v71_v22, %v77_v20 }
  0x9c   :  { %v82_v23 = vpop.permute.xlu0 %81 }
  0x9d   :  { %vm83_vm1 = vcmp.lt.s32.totalorder %v71_v22, %v82_v23 }
  0x9e   :  { %vm84_vm2 = vmand %vm78_vm0, %vm83_vm1 }
  0x9f   :  { %179 = vmatmul.msk.f32.vlgmr.msra.gmra.mxu0 %vm84_vm2, %v250_v24 }
 0x11c   :  { %v121_v26 = vpop.f32.mrf.mxu0 }
 0x11d   :  { %v124_v27 = vadd.f32 %v121_v26, %v87_v25 }
 0x11f   :  { %125 = vst [vmem:[#allocation8] sm:$0xff] %v124_v27 }
 0x120 PF:  { %v130_v28 = vld [vmem:[%s328_s4] sm:$0xff]  ;;  %v251_v29 = vmov 0   ;;  %s252_s4 = smov [#allocation8]   ;;  %s160_s29 = sshll.u32 %s330_s6, 4  ;;  %s161_s29 = int_to_ptr.hbm [resolvable:$true] %s160_s29 }
 0x121   :  { %190 = vset.pattern.permute.xlu0 %v251_v29  ;;  %s158_s26 = sshll.u32 %s252_s4, 4  ;;  %s159_s26 = int_to_ptr.vmem [resolvable:$true] %s158_s26 }
 0x122   :  { %133 = vperm.xlu0 %190, %v130_v28  }
 0x126   :  { %v129_v30 = vld [vmem:[#allocation8] sm:$0xff] }
 0x194   :  { %v134_v31 = vpop.permute.xlu0 %133 }
 0x195   :  { %v136_v32 = vmul.f32 %v134_v31, %v129_v30 }
 0x197   :  { %v137_v33 = vmul.f32 %v136_v32, %v136_v32 }
 0x199   :  { %138 = vadd.xlane.f32.xlu0 %v137_v33 }
 0x20c   :  { %v139_v34 = vpop.xlane.xlu0 %138 }
 0x20d   :  { %v140_v35 = vmax.f32 %v139_v34, 1e-24 }
 0x20f   :  { %191 = vrsqrt.f32 %v140_v35  ;;  %vm147_vm4 = vweird.f32 %v140_v35 }
 0x215   :  { %v192_v36 = vpop.eup %191 }
 0x216   :  { %v142_v37 = vmul.f32 %v192_v36, %v140_v35  ;;  %vm148_vm3 = vweird.f32 %v192_v36 }
 0x217   :  { %vm149_vm5 = vmor %vm147_vm4, %vm148_vm3 }
 0x218   :  { %v143_v38 = vmul.f32 %v192_v36, %v142_v37 }
 0x21a   :  { %v144_v39 = vmul.f32 0.5, %v143_v38 }
 0x21c   :  { %v145_v40 = vsub.f32 1.5, %v144_v39 }
 0x21e   :  { %v146_v41 = vmul.f32 %v192_v36, %v145_v40 }
 0x220   :  { %v150_v42 = vsel %vm149_vm5, %v192_v36, %v146_v41 }
 0x221   :  { %v151_v43 = vmul.f32 %v150_v42, %v136_v32 }
 0x223   :  { %152 = vst [vmem:[#allocation8] sm:$0xff] %v151_v43 }
 0x224   :  { %163 = dma.vmem_to_hbm [thread:$0]  %s159_s26, 128, %s161_s29, [#allocation7]  }
 0x225   :  { %243 = dma.done.wait [#allocation7], 128  }
 0x226   :  { %244 = vsyncadd [#allocation7], 4294967168 }
 0x227   :  { %168 = vsyncpa [#allocation6], 1 }
 0x228   :  { %169 = vsyncpa [#allocation7], 1 }

</bundles_post_ra>
